<compile_context>
chip_gen: v5e
topology: v5e:2x2
jax: 0.10.0
libtpu: 0.0.40
codegen_flags: <defaults>
</compile_context>

<pallas_src>
import jax
import jax.numpy as jnp
from jax import lax
from jax.experimental import pallas as pl
from jax.experimental.pallas import tpu as pltpu


LANES = 128                      # TPU vreg lane width
_MAX_TB = 2048                   # batch-tile cap; beyond this the x DMA is already saturated
_RESIDENT_1BUF_BYTES = 1 << 20   # single-buffer grid-invariant operands above this size


def _sublane_multiple(dtype) -> int:
    """Rows per packed sublane tile for this dtype: 8 (f32), 16 (bf16), 32 (int8/fp8)."""
    return max(8, 32 // jnp.dtype(dtype).itemsize)


def _round_down(x: int, m: int) -> int:
    return max(m, (x // m) * m)


def gating_kernel(x_ref, w_ref, b_ref, o_ref):
    # Canonical (M, K) x (K, N) MXU shape: the weight arrives pre-transposed
    # (D, E_pad) with weight-norm already folded in, so no in-kernel transpose
    # and no per-expert scale multiply are needed.
    logits = lax.dot_general(
        x_ref[...], w_ref[...],
        dimension_numbers=(((1,), (0,)), ((), ())),
        preferred_element_type=jnp.float32)            # (TB, E_pad) f32
    logits = logits + b_ref[...]                       # padded experts carry bias -1e30

    # Numerically stable softmax over the lane-dense (multiple-of-128) expert axis.
    # NOTE: in a partial last batch tile the padding rows also flow through exp();
    # rows are independent so they never contaminate real rows and the masked
    # store drops them -- do not "fix" this by reading those rows back.
    m = jnp.max(logits, axis=-1, keepdims=True)
    e = jnp.exp(logits - m)
    denom = jnp.sum(e, axis=-1, keepdims=True)
    # Exact reciprocal (approx=True EUP recip risks the 1e-5 reference tolerance).
    o_ref[...] = (e / denom).astype(o_ref.dtype)


def gating_network(x, weight_v, weight_g, bias, *, out_dtype=None, return_padded=False):
    """softmax(WeightNormLinear(x)).  x:(B,D), weight_v:(E,D), weight_g:(E,), bias:(E,)."""
    B, D = x.shape
    E = weight_v.shape[0]
    E_pad = max(LANES, pl.cdiv(E, LANES) * LANES)      # lane-dense output; do NOT pad to 256
    out_dtype = x.dtype if out_dtype is None else out_dtype

    # ---- fold weight-norm into the weight; pre-transpose & pad to (D, E_pad) ----
    # F.normalize(v, dim=1) * g  ==  v * (g / max(||v||, 1e-12))
    v32 = weight_v.astype(jnp.float32)
    norm = jnp.sqrt(jnp.sum(v32 * v32, axis=1))                          # (E,)
    scale = weight_g.astype(jnp.float32) / jnp.maximum(norm, 1e-12)      # (E,)
    w_scaled = (v32 * scale[:, None]).astype(weight_v.dtype)             # (E, D)
    wv = jnp.zeros((D, E_pad), dtype=weight_v.dtype).at[:, :E].set(w_scaled.T)

    # Bias row; padded expert lanes get -1e30 so exp() underflows to exactly 0.
    bias_row = jnp.full((1, E_pad), -1e30, dtype=jnp.float32)
    bias_row = bias_row.at[0, :E].set(bias.astype(jnp.float32))

    # ---- VMEM budgeting & batch tiling ------------------------------------------
    x_bytes = jnp.dtype(x.dtype).itemsize
    w_bytes = jnp.dtype(weight_v.dtype).itemsize
    o_bytes = jnp.dtype(out_dtype).itemsize
    try:
        vmem_cap = pltpu.get_tpu_info().vmem_capacity_bytes   # 128 MiB v5e/v6e, 64 MiB v7x
    except Exception:
        vmem_cap = 64 * 2**20                                 # conservative (v7x per-TC)
    vmem_budget = int(0.70 * vmem_cap)                        # Mosaic scratch headroom

    weight_bytes = D * E_pad * w_bytes
    # Grid-invariant operands (constant index_map) gain nothing from double
    # buffering; single-buffer them when they are big enough to matter.
    single_buffer_resident = weight_bytes >= _RESIDENT_1BUF_BYTES
    resident_bufs = 1 if single_buffer_resident else 2
    resident_bytes = resident_bufs * (weight_bytes + E_pad * 4)

    per_row_bytes = 2 * (D * x_bytes + E_pad * o_bytes)       # double-buffered x + out
    sub = _sublane_multiple(x.dtype)
    tb = max(sub, (vmem_budget - resident_bytes) // max(per_row_bytes, 1))
    tb = _round_down(min(int(tb), _MAX_TB), sub)
    if tb >= B:
        if B > 2 * sub:
            # v7x: guarantee >=2 grid tiles so both TensorCores get sharded work.
            tb = _round_down(B // 2, sub)
        else:
            tb = B                                            # single full-extent tile
    grid = (pl.cdiv(B, tb),)

    tile_bytes = resident_bytes + 2 * tb * (D * x_bytes + E_pad * o_bytes)
    vmem_limit = int(min(max(tile_bytes + (8 << 20), 32 << 20), vmem_budget))

    resident_kw = dict(pipeline_mode=pl.Buffered(1)) if single_buffer_resident else {}
    in_specs = [
        pl.BlockSpec((tb, D), lambda i: (i, 0)),                       # x tile (pipelined)
        pl.BlockSpec((D, E_pad), lambda i: (0, 0), **resident_kw),     # weight (resident)
        pl.BlockSpec((1, E_pad), lambda i: (0, 0), **resident_kw),     # bias row (resident)
    ]

    out_padded = pl.pallas_call(
        gating_kernel,
        out_shape=jax.ShapeDtypeStruct((B, E_pad), out_dtype),
        grid_spec=pltpu.PrefetchScalarGridSpec(
            num_scalar_prefetch=0,
            grid=grid,
            in_specs=in_specs,
            out_specs=pl.BlockSpec((tb, E_pad), lambda i: (i, 0)),
        ),
        compiler_params=pltpu.CompilerParams(
            dimension_semantics=("parallel",),     # shard batch tiles across v7x's 2 TCs
            vmem_limit_bytes=vmem_limit),
    )(x, wv, bias_row)

    if return_padded:
        return out_padded          # padded expert columns are exactly 0 (consumer may use directly)
    return out_padded[:, :E]


if __name__ == "__main__":
    batch, dim, num_experts = 8, 32, 8

    key = jax.random.PRNGKey(0)
    k_x, k_wv = jax.random.split(key)

    # Deterministic parameter init mirroring WeightNormLinear.__init__:
    #   weight_g = ones(E), weight_v = randn(E, D), bias = zeros(E)
    x = jax.random.normal(k_x, (batch, dim), dtype=jnp.float32)
    weight_v = jax.random.normal(k_wv, (num_experts, dim), dtype=jnp.float32)
    weight_g = jnp.ones((num_experts,), dtype=jnp.float32)
    bias = jnp.zeros((num_experts,), dtype=jnp.float32)

    out = gating_network(x, weight_v, weight_g, bias)
    out = jax.block_until_ready(out)

    # Reference check in plain JAX (same math as the PyTorch module).
    w_ref = weight_v / jnp.maximum(
        jnp.linalg.norm(weight_v, axis=1, keepdims=True), 1e-12)
    w_ref = w_ref * weight_g[:, None]
    ref = jax.nn.softmax(x @ w_ref.T + bias, axis=-1)
    assert out.shape == (batch, num_experts)
    assert jnp.allclose(out, ref, atol=1e-5, rtol=1e-5)
    assert jnp.allclose(jnp.sum(out, axis=-1), 1.0, atol=1e-5)

    print("KERNEL_OK")
</pallas_src>

<mosaic_0001>
module attributes {stable_mosaic.version = 11 : i64} {
  func.func @gating_kernel(%arg0: i32, %arg1: memref<8x32xf32, #tpu.memory_space<vmem>>, %arg2: memref<32x128xf32, #tpu.memory_space<vmem>>, %arg3: memref<1x128xf32, #tpu.memory_space<vmem>>, %arg4: memref<8x128xf32, #tpu.memory_space<vmem>>) attributes {dimension_semantics = [#tpu.dimension_semantics<parallel>], iteration_bounds = array<i64: 1>, scalar_prefetch = 0 : i64, scratch_operands = 0 : i64, tpu.core_type = #tpu.core_type<tc>, window_params = [{transform_indices = @transform_0, window_bounds = array<i64: 8, 32>}, {pipeline_mode = #tpu.pipeline_mode<synchronous>, transform_indices = @transform_1, window_bounds = array<i64: 32, 128>}, {pipeline_mode = #tpu.pipeline_mode<synchronous>, transform_indices = @transform_2, window_bounds = array<i64: 1, 128>}, {transform_indices = @transform_3, window_bounds = array<i64: 8, 128>}]} {
    %c0 = arith.constant 0 : index
    %c0_0 = arith.constant 0 : index
    %0 = vector.load %arg1[%c0, %c0_0] : memref<8x32xf32, #tpu.memory_space<vmem>>, vector<8x32xf32>
    %c0_1 = arith.constant 0 : index
    %c0_2 = arith.constant 0 : index
    %1 = vector.load %arg2[%c0_1, %c0_2] : memref<32x128xf32, #tpu.memory_space<vmem>>, vector<32x128xf32>
    %cst = arith.constant dense<0.000000e+00> : vector<8x128xf32>
    %2 = tpu.matmul %0, %1, %cst {dimension_numbers = #tpu.dot_dimension_numbers<[1], [0], [0], [1], [0, 0, 1, 1], [], []>} : vector<8x32xf32>, vector<32x128xf32>, vector<8x128xf32> -> vector<8x128xf32>
    %c0_3 = arith.constant 0 : index
    %c0_4 = arith.constant 0 : index
    %3 = vector.load %arg3[%c0_3, %c0_4] : memref<1x128xf32, #tpu.memory_space<vmem>>, vector<1x128xf32>
    %4 = vector.broadcast %3 : vector<1x128xf32> to vector<8x128xf32>
    %5 = arith.addf %2, %4 : vector<8x128xf32>
    %cst_5 = arith.constant dense<0xFF800000> : vector<8xf32>
    %6 = vector.multi_reduction <maximumf>, %5, %cst_5 [1] : vector<8x128xf32> to vector<8xf32>
    %7 = vector.shape_cast %6 : vector<8xf32> to vector<8x1xf32>
    %8 = vector.broadcast %7 : vector<8x1xf32> to vector<8x128xf32>
    %9 = arith.subf %5, %8 : vector<8x128xf32>
    %10 = math.exp %9 : vector<8x128xf32>
    %cst_6 = arith.constant dense<0.000000e+00> : vector<8xf32>
    %11 = vector.multi_reduction <add>, %10, %cst_6 [1] : vector<8x128xf32> to vector<8xf32>
    %12 = vector.shape_cast %11 : vector<8xf32> to vector<8x1xf32>
    %13 = vector.broadcast %12 : vector<8x1xf32> to vector<8x128xf32>
    %14 = arith.divf %10, %13 : vector<8x128xf32>
    %c0_7 = arith.constant 0 : index
    %c0_8 = arith.constant 0 : index
    %15 = vector.load %arg4[%c0_7, %c0_8] : memref<8x128xf32, #tpu.memory_space<vmem>>, vector<8x128xf32>
    tpu.vector_store %arg4[%c0_7, %c0_8], %14 {strides = array<i32>} : memref<8x128xf32, #tpu.memory_space<vmem>>, vector<8x128xf32>,
    return
  }
  func.func @transform_0(%arg0: i32) -> (i32, i32) {
    %c0_i32 = arith.constant 0 : i32
    %c0_i32_0 = arith.constant 0 : i32
    return %arg0, %c0_i32 : i32, i32
  }
  func.func @transform_1(%arg0: i32) -> (i32, i32) {
    %c0_i32 = arith.constant 0 : i32
    %c0_i32_0 = arith.constant 0 : i32
    %c0_i32_1 = arith.constant 0 : i32
    return %c0_i32, %c0_i32_0 : i32, i32
  }
  func.func @transform_2(%arg0: i32) -> (i32, i32) {
    %c0_i32 = arith.constant 0 : i32
    %c0_i32_0 = arith.constant 0 : i32
    %c0_i32_1 = arith.constant 0 : i32
    return %c0_i32, %c0_i32_0 : i32, i32
  }
  func.func @transform_3(%arg0: i32) -> (i32, i32) {
    %c0_i32 = arith.constant 0 : i32
    %c0_i32_0 = arith.constant 0 : i32
    return %arg0, %c0_i32 : i32, i32
  }
}

</mosaic_0001>

<bundles_post_ra>
// kernel: tpu_custom_call.1
= control target key start
LH: loop header
LB: loop body
LE: loop exit
PB: predicated region body
PF: predicated region fallthrough
CT: control target
= control target key end

     0   :  { %8 = vsyncpa [#allocation3], 0  ;;  %s245_s0 = inlined_call_operand.hbm [shape: f32[8,32], index: 0, kind: input, shape index: {}]   ;;  %s246_s1 = inlined_call_operand.hbm [shape: f32[32,128], index: 1, kind: input, shape index: {}]   ;;  %s247_s2 = inlined_call_operand.vmem [shape: f32[1,128], index: 2, kind: input, shape index: {}]   ;;  %s248_s3 = inlined_call_operand.hbm [shape: f32[8,128], index: 3, kind: output, shape index: {}]  }
   0x1   :  { %9 = vsyncpa [#allocation6], 0 }
   0x2   :  { %10 = vsyncpa [#allocation4], 0  ;;  %s16_s14 = sshll.u32 %s245_s0, 4  ;;  %s208_s15 = smov [#allocation2]   ;;  %s17_s14 = int_to_ptr.hbm [resolvable:$true] %s16_s14 }
   0x3   :  { %s18_s16 = sshll.u32 %s208_s15, 4  ;;  %s26_s19 = sshll.u32 %s246_s1, 4  ;;  %s19_s16 = int_to_ptr.vmem [resolvable:$true] %s18_s16  ;;  %s27_s19 = int_to_ptr.hbm [resolvable:$true] %s26_s19 }
   0x4   :  { %21 = dma.hbm_to_vmem [thread:$0]  %s17_s14, 128, %s19_s16, [#allocation3]  }
   0x5   :  { %s209_s20 = smov [#allocation5]   ;;  %s210_s22 = smov 128  }
   0x6   :  { %s28_s21 = sshll.u32 %s209_s20, 4  ;;  %s211_s23 = smov 8   ;;  %s29_s21 = int_to_ptr.vmem [resolvable:$true] %s28_s21 }
   0x7   :  { %34 = dma.hbm_to_vmem [thread:$0]  %s27_s19, 512, %s29_s21, [#allocation6], %s210_s22, %s210_s22, %s211_s23  }
   0x8   :  { %202 = dma.done.wait [#allocation3], 128  }
   0x9   :  { %203 = vsyncadd [#allocation3], 4294967168 }
   0xa   :  { %204 = dma.done.wait [#allocation6], 512  }
   0xb   :  { %205 = vsyncadd [#allocation6], 4294966784  ;;  %v49_v0 = vld [vmem:[#allocation5 + $0x18] sm:$0xff]  ;;  %v48_v1 = vld [vmem:[#allocation5 + $0x10] sm:$0xff]  ;;  %vm54_vm0 = vcmask 261120   ;;  %s108_s27 = sshll.u32 %s248_s3, 4  ;;  %s109_s27 = int_to_ptr.hbm [resolvable:$true] %s108_s27 }
   0xc   :  { %70 = vmatpush.msra.mxu0 %v49_v0  ;;  %v47_v2 = vld [vmem:[#allocation5 + $0x8] sm:$0xff]  ;;  %v46_v3 = vld [vmem:[#allocation5] sm:$0xff]  ;;  %v45_v4 = vld [vmem:[#allocation2] sm:$0xff] }
   0xd   :  { %v125_v5 = vld [vmem:[%s247_s2] ss:$0 sm:$0xff]  ;;  %s212_s2 = smov [#allocation7]  }
   0xe   :  { %71 = vmatpush.msra.mxu0 %v48_v1  ;;  %s106_s24 = sshll.u32 %s212_s2, 4  ;;  %s107_s24 = int_to_ptr.vmem [resolvable:$true] %s106_s24 }
  0x10   :  { %72 = vmatpush.msra.mxu0 %v47_v2 }
  0x12   :  { %73 = vmatpush.msra.mxu0 %v46_v3 }
  0x13   :  { %119 = vmatmul.msk.f32.vlgmr.msra.gmra.mxu0 %vm54_vm0, %v45_v4 }
  0x90   :  { %v75_v6 = vpop.f32.mrf.mxu0 }
  0x91   :  { %v76_v7 = vadd.f32 %v125_v5, %v75_v6 }
  0x93   :  { %78 = vmax.xlane.f32.xlu0 %v76_v7 }
 0x106   :  { %v79_v8 = vpop.xlane.xlu0 %78 }
 0x107   :  { %v80_v9 = vsub.f32 %v76_v7, %v79_v8 }
 0x109   :  { %v81_v10 = vmul.f32 1.442695, %v80_v9 }
 0x10b   :  { %126 = vpow2.f32 %v81_v10 }
 0x111   :  { %v127_v11 = vpop.eup %126 }
 0x112   :  { %83 = vadd.xlane.f32.xlu0 %v127_v11 }
 0x185   :  { %v84_v12 = vpop.xlane.xlu0 %83 }
 0x186   :  { %128 = vrcp.f32 %v84_v12  ;;  %v96_v16 = vand.u32 2147483648, %v84_v12  ;;  %v94_v18 = vand.u32 2147483647, %v84_v12  ;;  %vm90_vm2 = vweird.f32 %v84_v12 }
 0x188   :  { %v97_v20 = vor.u32 1.1754944e-38, %v96_v16  ;;  %vm95_vm4 = vcmp.eq.f32.partialorder %v94_v18, 8.507059e+37 }
 0x18c   :  { %v129_v13 = vpop.eup %128 }
 0x18d   :  { %v86_v14 = vmul.f32 %v129_v13, %v84_v12  ;;  %vm91_vm1 = vweird.f32 %v129_v13 }
 0x18e   :  { %vm92_vm3 = vmor %vm90_vm2, %vm91_vm1 }
 0x18f   :  { %v87_v15 = vsub.f32 1.0, %v86_v14 }
 0x191   :  { %v88_v17 = vmul.f32 %v129_v13, %v87_v15 }
 0x193   :  { %v89_v19 = vadd.f32 %v129_v13, %v88_v17 }
 0x195   :  { %v93_v21 = vsel %vm92_vm3, %v129_v13, %v89_v19 }
 0x196   :  { %v98_v22 = vsel %vm95_vm4, %v97_v20, %v93_v21 }
 0x197   :  { %v99_v23 = vmul.f32 %v127_v11, %v98_v22 }
 0x199   :  { %100 = vst [vmem:[#allocation7] sm:$0xff] %v99_v23 }
 0x19a   :  { %111 = dma.vmem_to_hbm [thread:$0]  %s107_s24, 128, %s109_s27, [#allocation4]  }
 0x19b   :  { %206 = dma.done.wait [#allocation4], 128  }
 0x19c   :  { %207 = vsyncadd [#allocation4], 4294967168 }
 0x19d   :  { %116 = vsyncpa [#allocation3], 1 }
 0x19e   :  { %117 = vsyncpa [#allocation6], 1 }
 0x19f   :  { %118 = vsyncpa [#allocation4], 1 }

</bundles_post_ra>
